<compile_context>
chip_gen: v7x
topology: tpu7x:2x2x1
jax: 0.10.0
libtpu: 0.0.40
codegen_flags: <defaults>
</compile_context>

<pallas_src>
import functools

import jax
import jax.numpy as jnp
from jax import lax
from jax.experimental import pallas as pl
from jax.experimental.pallas import tpu as pltpu

_NORM_EPS = 1e-12          # F.normalize default eps
_SQRT_HALF = 0.7071067811865476
_VMEM_LIMIT = 40 * 1024 * 1024   # fits v7x's 64 MiB physical VMEM with headroom


def _pick_tile(total: int, target: int, mult: int = 8) -> int:
    """Largest tile <= target dividing `total`, multiple of `mult` (else full extent)."""
    if total <= target:
        return total
    for t in range(min(target, total), 0, -1):
        if total % t == 0 and t % mult == 0:
            return t
    # TODO(synk): masked-tail (pl.cdiv) path for extents with no clean divisor.
    return total


def _rms_normalize(x_f32, nscale_f32):
    # l2norm(x) * (gamma + 1) * sqrt(dim); nscale == (gamma + 1) * sqrt(dim) precomputed.
    ss = jnp.sum(x_f32 * x_f32, axis=-1, keepdims=True)
    inv = lax.rsqrt(jnp.maximum(ss, _NORM_EPS * _NORM_EPS))
    return x_f32 * inv * nscale_f32


def _erf(x):
    # Abramowitz & Stegun 7.1.26 (|err| < 1.5e-7): exact-GELU semantics without relying
    # on an erf lowering inside Mosaic.  The divide goes to the EUP slot (approx recip).
    a1, a2, a3, a4, a5 = 0.254829592, -0.284496736, 1.421413741, -1.453152027, 1.061405429
    p = 0.3275911
    ax = jnp.abs(x)
    t = pl.reciprocal(1.0 + p * ax, approx=True)
    poly = ((((a5 * t + a4) * t + a3) * t + a2) * t + a1) * t
    y = 1.0 - poly * jnp.exp(-ax * ax)
    return jnp.where(x >= 0.0, y, -y)


def _gelu(x):
    return 0.5 * x * (1.0 + _erf(x * _SQRT_HALF))


# ----------------------------------------------------------------------------- kernels

def _qkv_proj_kernel(x_ref, nscale_ref, wq_ref, wkv_ref, q_ref, k_ref, v_ref, xn_sc):
    """Per-(batch, row-tile, head) q/k/v projection, head-major outputs.

    q path uses the RMS-normalized x (cached in VMEM scratch across the heads axis);
    k/v come from the *un-normed* x via one fused (dim, 2*dh) matmul.  The 1/sqrt(dh)
    attention scale is already folded into wq host-side.
    """
    dh = q_ref.shape[-1]
    x = x_ref[0]                                        # (TR, dim) in input dtype

    @pl.when(pl.program_id(2) == 0)
    def _cache_normed_x():
        xn_sc[...] = _rms_normalize(x.astype(jnp.float32), nscale_ref[...]).astype(xn_sc.dtype)

    q_ref[0, 0] = jnp.dot(xn_sc[...], wq_ref[0],
                          preferred_element_type=jnp.float32).astype(q_ref.dtype)
    kv = jnp.dot(x, wkv_ref[0], preferred_element_type=jnp.float32)
    k_ref[0, 0] = kv[:, :dh].astype(k_ref.dtype)
    v_ref[0, 0] = kv[:, dh:].astype(v_ref.dtype)


def _flash_attn_kernel(xres_ref, q_ref, k_ref, v_ref, mk_ref, mv_ref, wo_ref,
                       o_ref, m_i, l_i, acc, o_acc):
    h = pl.program_id(2)
    ik = pl.program_id(3)
    last_h = pl.num_programs(2) - 1
    last_k = pl.num_programs(3) - 1
    nt = (((1,), (1,)), ((), ()))       # contract last dims: (TQ,dh) x (TK,dh) -> (TQ,TK)

    @pl.when(jnp.logical_and(h == 0, ik == 0))
    def _zero_out_proj_acc():
        o_acc[...] = jnp.zeros_like(o_acc)

    q = q_ref[0, 0]                     # (TQ, dh), already scaled by dh**-0.5 (in wq)

    @pl.when(ik == 0)
    def _init_online_softmax():
        # Learned mem_kv block initializes the running softmax state, once per
        # (batch, q_tile, head) — no per-key-tile merge.
        mk = mk_ref[0]                  # (m, dh)
        mv = mv_ref[0]
        s_mem = lax.dot_general(q, mk, nt, preferred_element_type=jnp.float32)
        m0 = jnp.max(s_mem, axis=-1, keepdims=True)
        p0 = jnp.exp(s_mem - m0)
        m_i[...] = m0
        l_i[...] = jnp.sum(p0, axis=-1, keepdims=True)
        acc[...] = jnp.dot(p0.astype(mv.dtype), mv, preferred_element_type=jnp.float32)

    # One key tile of the online-softmax (flash) recurrence; stats stay f32.
    k = k_ref[0, 0]                     # (TK, dh)
    v = v_ref[0, 0]
    s = lax.dot_general(q, k, nt, preferred_element_type=jnp.float32)       # (TQ, TK)
    m_prev = m_i[...]
    m_new = jnp.maximum(m_prev, jnp.max(s, axis=-1, keepdims=True))
    alpha = jnp.exp(m_prev - m_new)
    p = jnp.exp(s - m_new)
    l_i[...] = alpha * l_i[...] + jnp.sum(p, axis=-1, keepdims=True)
    acc[...] = alpha * acc[...] + jnp.dot(p.astype(v.dtype), v,
                                          preferred_element_type=jnp.float32)
    m_i[...] = m_new

    @pl.when(ik == last_k)
    def _fold_head_into_output():
        # Exact reciprocal: runs once per (batch, q_tile, head), negligible cost.
        oh = acc[...] / l_i[...]                                     # (TQ, dh) f32
        o_acc[...] += jnp.dot(oh.astype(wo_ref.dtype), wo_ref[0],
                              preferred_element_type=jnp.float32)

    @pl.when(jnp.logical_and(h == last_h, ik == last_k))
    def _store_with_residual():
        o_ref[0] = (xres_ref[0].astype(jnp.float32) + o_acc[...]).astype(o_ref.dtype)


def _feedforward_kernel(x_ref, nscale_ref, w1_ref, b1_ref, w2_ref, b2_ref, *rest,
                        apply_final_norm):
    """FF tiled over the hidden (ff_inner) axis; residual + (optional final norm) fused."""
    if apply_final_norm:
        fnorm_ref, o_ref, xn_sc, acc = rest
    else:
        o_ref, xn_sc, acc = rest
        fnorm_ref = None
    j = pl.program_id(1)
    last_j = pl.num_programs(1) - 1

    @pl.when(j == 0)
    def _init():
        xf = x_ref[...].astype(jnp.float32)
        xn_sc[...] = _rms_normalize(xf, nscale_ref[...]).astype(xn_sc.dtype)
        acc[...] = xf                                    # residual stream

    hidden = jnp.dot(xn_sc[...], w1_ref[...], preferred_element_type=jnp.float32)
    hidden = _gelu(hidden + b1_ref[...].astype(jnp.float32))
    acc[...] += jnp.dot(hidden.astype(w2_ref.dtype), w2_ref[...],
                        preferred_element_type=jnp.float32)

    @pl.when(j == last_j)
    def _store():
        y = acc[...] + b2_ref[...].astype(jnp.float32)
        if apply_final_norm:                             # fused final RMSNorm (last layer)
            y = _rms_normalize(y, fnorm_ref[...])
        o_ref[...] = y.astype(o_ref.dtype)


def _rmsnorm_kernel(x_ref, nscale_ref, o_ref):
    o_ref[...] = _rms_normalize(x_ref[...].astype(jnp.float32),
                                nscale_ref[...]).astype(o_ref.dtype)


# ----------------------------------------------------------------------------- wrappers

def attention_block(x, p, *, heads, dim_head, num_mem_kv,
                    block_q=256, block_k=256, row_tile=512):
    b, n, dim = x.shape
    assert num_mem_kv > 0, "Transformer uses TransformerAttention's default num_mem_kv=4"
    sub_mult = 16 if x.dtype == jnp.bfloat16 else 8

    # ---- 1) q/k/v projections written head-major: no XLA transpose round-trip ----
    tr = _pick_tile(n, row_tile, mult=sub_mult)
    q4, k4, v4 = pl.pallas_call(
        _qkv_proj_kernel,
        out_shape=tuple(jax.ShapeDtypeStruct((b, heads, n, dim_head), x.dtype)
                        for _ in range(3)),
        grid_spec=pltpu.PrefetchScalarGridSpec(
            num_scalar_prefetch=0,
            grid=(b, n // tr, heads),                 # heads innermost: x tile reused
            in_specs=[
                pl.BlockSpec((1, tr, dim), lambda ib, ir, h: (ib, ir, 0)),             # x
                pl.BlockSpec((1, dim), lambda ib, ir, h: (0, 0)),                      # nscale
                pl.BlockSpec((1, dim, dim_head), lambda ib, ir, h: (h, 0, 0)),         # wq (scaled)
                pl.BlockSpec((1, dim, 2 * dim_head), lambda ib, ir, h: (h, 0, 0)),     # wk|wv fused
            ],
            out_specs=tuple(
                pl.BlockSpec((1, 1, tr, dim_head), lambda ib, ir, h: (ib, h, ir, 0))
                for _ in range(3)),
            scratch_shapes=[pltpu.VMEM((tr, dim), x.dtype)],      # cached normalized x
        ),
        compiler_params=pltpu.CompilerParams(
            dimension_semantics=("parallel", "parallel", "arbitrary"),
            vmem_limit_bytes=_VMEM_LIMIT,
        ),
    )(x, p["nscale"], p["wq_h"], p["wkv_h"])

    # ---- 2) flash attention + per-head out-projection + residual ----
    tq = _pick_tile(n, block_q, mult=sub_mult)
    tk = _pick_tile(n, block_k, mult=sub_mult)
    grid = (b, n // tq, heads, n // tk)                 # reduction (key) axis last

    return pl.pallas_call(
        _flash_attn_kernel,
        out_shape=jax.ShapeDtypeStruct((b, n, dim), x.dtype),
        grid_spec=pltpu.PrefetchScalarGridSpec(
            num_scalar_prefetch=0,
            grid=grid,
            in_specs=[
                pl.BlockSpec((1, tq, dim), lambda ib, iq, h, ik: (ib, iq, 0)),            # residual
                pl.BlockSpec((1, 1, tq, dim_head), lambda ib, iq, h, ik: (ib, h, iq, 0)),  # q
                pl.BlockSpec((1, 1, tk, dim_head), lambda ib, iq, h, ik: (ib, h, ik, 0)),  # k
                pl.BlockSpec((1, 1, tk, dim_head), lambda ib, iq, h, ik: (ib, h, ik, 0)),  # v
                pl.BlockSpec((1, num_mem_kv, dim_head), lambda ib, iq, h, ik: (h, 0, 0)),  # mem_k
                pl.BlockSpec((1, num_mem_kv, dim_head), lambda ib, iq, h, ik: (h, 0, 0)),  # mem_v
                pl.BlockSpec((1, dim_head, dim), lambda ib, iq, h, ik: (h, 0, 0)),         # wo
            ],
            out_specs=pl.BlockSpec((1, tq, dim), lambda ib, iq, h, ik: (ib, iq, 0)),
            scratch_shapes=[
                pltpu.VMEM((tq, 1), jnp.float32),         # m_i (running max)
                pltpu.VMEM((tq, 1), jnp.float32),         # l_i (running sum)
                pltpu.VMEM((tq, dim_head), jnp.float32),  # per-head accumulator
                pltpu.VMEM((tq, dim), jnp.float32),       # out-projection accumulator
            ],
        ),
        compiler_params=pltpu.CompilerParams(
            dimension_semantics=("parallel", "parallel", "arbitrary", "arbitrary"),
            vmem_limit_bytes=_VMEM_LIMIT,
        ),
    )(x, q4, k4, v4, p["mem_k"], p["mem_v"], p["wo_h"])


def feedforward_block(x, p, *, final_nscale=None, row_tile=256, hidden_tile=512):
    b, n, dim = x.shape
    rows = b * n
    ff_inner = p["w1"].shape[-1]
    sub_mult = 16 if x.dtype == jnp.bfloat16 else 8
    tr = _pick_tile(rows, row_tile, mult=sub_mult)
    th = _pick_tile(ff_inner, hidden_tile, mult=128)      # lane-aligned hidden tile
    x2 = x.reshape(rows, dim)

    apply_final = final_nscale is not None
    kernel = functools.partial(_feedforward_kernel, apply_final_norm=apply_final)

    in_specs = [
        pl.BlockSpec((tr, dim), lambda i, j: (i, 0)),     # x (reused across hidden tiles)
        pl.BlockSpec((1, dim), lambda i, j: (0, 0)),      # norm scale
        pl.BlockSpec((dim, th), lambda i, j: (0, j)),     # w1 hidden tile
        pl.BlockSpec((1, th), lambda i, j: (0, j)),       # b1 hidden tile
        pl.BlockSpec((th, dim), lambda i, j: (j, 0)),     # w2 hidden tile
        pl.BlockSpec((1, dim), lambda i, j: (0, 0)),      # b2
    ]
    args = [x2, p["nscale"], p["w1"], p["b1"], p["w2"], p["b2"]]
    if apply_final:
        in_specs.append(pl.BlockSpec((1, dim), lambda i, j: (0, 0)))   # final norm scale
        args.append(final_nscale)

    y2 = pl.pallas_call(
        kernel,
        out_shape=jax.ShapeDtypeStruct((rows, dim), x.dtype),
        grid_spec=pltpu.PrefetchScalarGridSpec(
            num_scalar_prefetch=0,
            grid=(rows // tr, ff_inner // th),            # hidden reduction axis last
            in_specs=in_specs,
            out_specs=pl.BlockSpec((tr, dim), lambda i, j: (i, 0)),
            scratch_shapes=[pltpu.VMEM((tr, dim), x.dtype),      # cached normalized x
                            pltpu.VMEM((tr, dim), jnp.float32)],  # residual+FF accumulator
        ),
        compiler_params=pltpu.CompilerParams(
            dimension_semantics=("parallel", "arbitrary"),
            vmem_limit_bytes=_VMEM_LIMIT,
        ),
    )(*args)
    return y2.reshape(b, n, dim)


def final_rmsnorm(x, nscale, *, row_tile=512):
    # Only used when depth == 0 (otherwise fused into the last FF kernel).
    b, n, dim = x.shape
    rows = b * n
    sub_mult = 16 if x.dtype == jnp.bfloat16 else 8
    tr = _pick_tile(rows, row_tile, mult=sub_mult)
    y2 = pl.pallas_call(
        _rmsnorm_kernel,
        out_shape=jax.ShapeDtypeStruct((rows, dim), x.dtype),
        grid_spec=pltpu.PrefetchScalarGridSpec(
            num_scalar_prefetch=0,
            grid=(rows // tr,),
            in_specs=[pl.BlockSpec((tr, dim), lambda i: (i, 0)),
                      pl.BlockSpec((1, dim), lambda i: (0, 0))],
            out_specs=pl.BlockSpec((tr, dim), lambda i: (i, 0)),
        ),
        compiler_params=pltpu.CompilerParams(
            dimension_semantics=("parallel",), vmem_limit_bytes=_VMEM_LIMIT),
    )(x.reshape(rows, dim), nscale)
    return y2.reshape(b, n, dim)


def prepare_params(params, *, heads, dim_head):
    """One-time host-side parameter prep: head-major weight slabs, fused k/v weight,
    attention scale folded into wq, (gamma+1)*sqrt(dim) precomputed."""
    attn_scale = float(dim_head) ** -0.5

    def prep_layer(layer):
        a, f = layer["attn"], layer["ff"]
        dim = a["wq"].shape[0]
        nscale = (float(dim) ** 0.5)
        wq_h = (a["wq"].reshape(dim, heads, dim_head) * attn_scale).transpose(1, 0, 2)
        wkv_h = jnp.concatenate(
            [a["wk"].reshape(dim, heads, dim_head),
             a["wv"].reshape(dim, heads, dim_head)], axis=-1).transpose(1, 0, 2)
        attn_p = {
            "nscale": (a["gamma"].astype(jnp.float32) + 1.0) * nscale,   # (1, dim)
            "wq_h": wq_h,                       # (heads, dim, dh), pre-scaled
            "wkv_h": wkv_h,                     # (heads, dim, 2*dh)
            "wo_h": a["wo"].reshape(heads, dim_head, dim),
            "mem_k": a["mem_k"], "mem_v": a["mem_v"],
        }
        ff_p = {
            "nscale": (f["gamma"].astype(jnp.float32) + 1.0) * nscale,
            "w1": f["w1"], "b1": f["b1"], "w2": f["w2"], "b2": f["b2"],
        }
        return {"attn": attn_p, "ff": ff_p}

    dim = params["final_gamma"].shape[-1]
    return {"layers": [prep_layer(l) for l in params["layers"]],
            "final_nscale": (params["final_gamma"].astype(jnp.float32) + 1.0)
                            * (float(dim) ** 0.5)}


def transformer_forward(x, prepared, *, heads, dim_head, num_mem_kv):
    layers = prepared["layers"]
    for li, layer in enumerate(layers):
        x = attention_block(x, layer["attn"], heads=heads, dim_head=dim_head,
                            num_mem_kv=num_mem_kv)
        is_last = li == len(layers) - 1
        x = feedforward_block(
            x, layer["ff"],
            final_nscale=prepared["final_nscale"] if is_last else None)
    if not layers:
        x = final_rmsnorm(x, prepared["final_nscale"])
    return x


# ----------------------------------------------------------------------------- reference

def transformer_ref(x, params, *, heads, dim_head, num_mem_kv):
    """Pure-JAX reference of the PyTorch Transformer forward (eval mode, defaults)."""
    def rmsnorm(t, gamma):
        nrm = jnp.sqrt(jnp.sum(t * t, axis=-1, keepdims=True))
        return t / jnp.maximum(nrm, _NORM_EPS) * (gamma + 1.0) * (t.shape[-1] ** 0.5)

    b, n, dim = x.shape
    inner = heads * dim_head
    for layer in params["layers"]:
        a = layer["attn"]
        xn = rmsnorm(x, a["gamma"])
        q, k, v = xn @ a["wq"], x @ a["wk"], x @ a["wv"]

        def split(t):
            return t.reshape(b, n, heads, dim_head).transpose(0, 2, 1, 3)
        qh, kh, vh = split(q), split(k), split(v)
        mk = jnp.broadcast_to(a["mem_k"], (b, heads, num_mem_kv, dim_head))
        mv = jnp.broadcast_to(a["mem_v"], (b, heads, num_mem_kv, dim_head))
        kh = jnp.concatenate([mk, kh], axis=2)
        vh = jnp.concatenate([mv, vh], axis=2)
        s = jnp.einsum("bhid,bhjd->bhij", qh, kh) * (dim_head ** -0.5)
        pr = jax.nn.softmax(s, axis=-1)
        o = jnp.einsum("bhij,bhjd->bhid", pr, vh)
        o = o.transpose(0, 2, 1, 3).reshape(b, n, inner)
        x = x + o @ a["wo"]

        f = layer["ff"]
        hdn = rmsnorm(x, f["gamma"]) @ f["w1"] + f["b1"]
        hdn = jax.nn.gelu(hdn, approximate=False)
        x = x + hdn @ f["w2"] + f["b2"]
    return rmsnorm(x, params["final_gamma"])


def init_params(key, *, dim, dim_head, heads, num_mem_kv, depth, ff_mult=4):
    inner = dim_head * heads
    ff_inner = dim * ff_mult
    layers = []
    for _ in range(depth):
        key, *ks = jax.random.split(key, 12)
        attn = {
            "gamma": 0.1 * jax.random.normal(ks[0], (1, dim), jnp.float32),
            "wq": 0.05 * jax.random.normal(ks[1], (dim, inner), jnp.float32),
            "wk": 0.05 * jax.random.normal(ks[2], (dim, inner), jnp.float32),
            "wv": 0.05 * jax.random.normal(ks[3], (dim, inner), jnp.float32),
            "wo": 0.05 * jax.random.normal(ks[4], (inner, dim), jnp.float32),
            "mem_k": jax.random.normal(ks[5], (heads, num_mem_kv, dim_head), jnp.float32),
            "mem_v": jax.random.normal(ks[6], (heads, num_mem_kv, dim_head), jnp.float32),
        }
        ff = {
            "gamma": 0.1 * jax.random.normal(ks[7], (1, dim), jnp.float32),
            "w1": 0.05 * jax.random.normal(ks[8], (dim, ff_inner), jnp.float32),
            "b1": 0.05 * jax.random.normal(ks[9], (1, ff_inner), jnp.float32),
            "w2": 0.05 * jax.random.normal(ks[10], (ff_inner, dim), jnp.float32),
            "b2": jnp.zeros((1, dim), jnp.float32),
        }
        layers.append({"attn": attn, "ff": ff})
    key, kf = jax.random.split(key)
    return {"layers": layers,
            "final_gamma": 0.1 * jax.random.normal(kf, (1, dim), jnp.float32)}


if __name__ == "__main__":
    # Small, module-consistent shapes.
    batch, seq = 2, 8
    dim, dim_head, heads, num_mem_kv, depth = 32, 16, 4, 4, 2

    key = jax.random.PRNGKey(0)
    key, kx = jax.random.split(key)
    x = jax.random.normal(kx, (batch, seq, dim), dtype=jnp.float32)
    params = init_params(key, dim=dim, dim_head=dim_head, heads=heads,
                         num_mem_kv=num_mem_kv, depth=depth)
    prepared = prepare_params(params, heads=heads, dim_head=dim_head)

    out = transformer_forward(x, prepared, heads=heads, dim_head=dim_head,
                              num_mem_kv=num_mem_kv)
    out = jax.block_until_ready(out)
    ref = transformer_ref(x, params, heads=heads, dim_head=dim_head,
                          num_mem_kv=num_mem_kv)

    assert out.shape == (batch, seq, dim)
    err = float(jnp.max(jnp.abs(out - ref)))
    # polynomial erf (~1.5e-7 abs) + EUP approx reciprocal inside GELU introduce only tiny
    # error; any structural bug would show as an O(1) mismatch.
    assert err < 1e-2, f"max abs err = {err}"
    print("KERNEL_OK")
</pallas_src>

<mosaic_0001>
module attributes {stable_mosaic.version = 11 : i64} {
  func.func @_qkv_proj_kernel(%arg0: i32, %arg1: i32, %arg2: i32, %arg3: memref<1x8x32xf32, #tpu.memory_space<vmem>>, %arg4: memref<1x32xf32, #tpu.memory_space<vmem>>, %arg5: memref<1x32x16xf32, #tpu.memory_space<vmem>>, %arg6: memref<1x32x32xf32, #tpu.memory_space<vmem>>, %arg7: memref<1x1x8x16xf32, #tpu.memory_space<vmem>>, %arg8: memref<1x1x8x16xf32, #tpu.memory_space<vmem>>, %arg9: memref<1x1x8x16xf32, #tpu.memory_space<vmem>>, %arg10: memref<8x32xf32, #tpu.memory_space<vmem>>) attributes {dimension_semantics = [#tpu.dimension_semantics<parallel>, #tpu.dimension_semantics<parallel>, #tpu.dimension_semantics<arbitrary>], iteration_bounds = array<i64: 2, 1, 4>, scalar_prefetch = 0 : i64, scratch_operands = 1 : i64, tpu.core_type = #tpu.core_type<tc>, window_params = [{transform_indices = @transform_0, window_bounds = array<i64: 1, 8, 32>}, {pipeline_mode = #tpu.pipeline_mode<synchronous>, transform_indices = @transform_1, window_bounds = array<i64: 1, 32>}, {transform_indices = @transform_2, window_bounds = array<i64: 1, 32, 16>}, {transform_indices = @transform_3, window_bounds = array<i64: 1, 32, 32>}, {transform_indices = @transform_4, window_bounds = array<i64: 1, 1, 8, 16>}, {transform_indices = @transform_5, window_bounds = array<i64: 1, 1, 8, 16>}, {transform_indices = @transform_6, window_bounds = array<i64: 1, 1, 8, 16>}]} {
    %c0 = arith.constant 0 : index
    %c0_0 = arith.constant 0 : index
    %c0_1 = arith.constant 0 : index
    %0 = vector.load %arg3[%c0, %c0_0, %c0_1] : memref<1x8x32xf32, #tpu.memory_space<vmem>>, vector<1x8x32xf32>
    %1 = vector.shape_cast %0 : vector<1x8x32xf32> to vector<8x32xf32>
    %c0_i32 = arith.constant 0 : i32
    %2 = arith.cmpi eq, %arg2, %c0_i32 : i32
    %3 = arith.extui %2 : i1 to i32
    %c0_i32_2 = arith.constant 0 : i32
    %4 = arith.cmpi ne, %3, %c0_i32_2 : i32
    scf.if %4 {
      %c0_24 = arith.constant 0 : index
      %c0_25 = arith.constant 0 : index
      %23 = vector.load %arg4[%c0_24, %c0_25] : memref<1x32xf32, #tpu.memory_space<vmem>>, vector<1x32xf32>
      %24 = arith.mulf %1, %1 : vector<8x32xf32>
      %cst_26 = arith.constant dense<0.000000e+00> : vector<8xf32>
      %25 = vector.multi_reduction <add>, %24, %cst_26 [1] : vector<8x32xf32> to vector<8xf32>
      %26 = vector.shape_cast %25 : vector<8xf32> to vector<8x1xf32>
      %cst_27 = arith.constant 1.000000e-24 : f32
      %27 = vector.broadcast %cst_27 : f32 to vector<8x1xf32>
      %28 = arith.maximumf %26, %27 : vector<8x1xf32>
      %29 = math.rsqrt %28 : vector<8x1xf32>
      %30 = vector.broadcast %29 : vector<8x1xf32> to vector<8x32xf32>
      %31 = arith.mulf %1, %30 : vector<8x32xf32>
      %32 = vector.broadcast %23 : vector<1x32xf32> to vector<8x32xf32>
      %33 = arith.mulf %31, %32 : vector<8x32xf32>
      %c0_28 = arith.constant 0 : index
      %c0_29 = arith.constant 0 : index
      %34 = vector.load %arg10[%c0_28, %c0_29] : memref<8x32xf32, #tpu.memory_space<vmem>>, vector<8x32xf32>
      tpu.vector_store %arg10[%c0_28, %c0_29], %33 {strides = array<i32>} : memref<8x32xf32, #tpu.memory_space<vmem>>, vector<8x32xf32>,
    } else {
    }
    %c0_3 = arith.constant 0 : index
    %c0_4 = arith.constant 0 : index
    %5 = vector.load %arg10[%c0_3, %c0_4] : memref<8x32xf32, #tpu.memory_space<vmem>>, vector<8x32xf32>
    %c0_5 = arith.constant 0 : index
    %c0_6 = arith.constant 0 : index
    %c0_7 = arith.constant 0 : index
    %6 = vector.load %arg5[%c0_5, %c0_6, %c0_7] : memref<1x32x16xf32, #tpu.memory_space<vmem>>, vector<1x32x16xf32>
    %7 = vector.shape_cast %6 : vector<1x32x16xf32> to vector<32x16xf32>
    %cst = arith.constant dense<0.000000e+00> : vector<8x16xf32>
    %8 = tpu.matmul %5, %7, %cst {dimension_numbers = #tpu.dot_dimension_numbers<[1], [0], [0], [1], [0, 0, 1, 1], [], []>} : vector<8x32xf32>, vector<32x16xf32>, vector<8x16xf32> -> vector<8x16xf32>
    %c0_8 = arith.constant 0 : index
    %c0_9 = arith.constant 0 : index
    %c0_10 = arith.constant 0 : index
    %c0_11 = arith.constant 0 : index
    %9 = vector.load %arg7[%c0_8, %c0_9, %c0_10, %c0_11] : memref<1x1x8x16xf32, #tpu.memory_space<vmem>>, vector<1x1x8x16xf32>
    %10 = vector.shape_cast %9 : vector<1x1x8x16xf32> to vector<8x16xf32>
    %11 = vector.shape_cast %8 : vector<8x16xf32> to vector<1x1x8x16xf32>
    tpu.vector_store %arg7[%c0_8, %c0_9, %c0_10, %c0_11], %11 {strides = array<i32>} : memref<1x1x8x16xf32, #tpu.memory_space<vmem>>, vector<1x1x8x16xf32>,
    %c0_12 = arith.constant 0 : index
    %c0_13 = arith.constant 0 : index
    %c0_14 = arith.constant 0 : index
    %12 = vector.load %arg6[%c0_12, %c0_13, %c0_14] : memref<1x32x32xf32, #tpu.memory_space<vmem>>, vector<1x32x32xf32>
    %13 = vector.shape_cast %12 : vector<1x32x32xf32> to vector<32x32xf32>
    %cst_15 = arith.constant dense<0.000000e+00> : vector<8x32xf32>
    %14 = tpu.matmul %1, %13, %cst_15 {dimension_numbers = #tpu.dot_dimension_numbers<[1], [0], [0], [1], [0, 0, 1, 1], [], []>} : vector<8x32xf32>, vector<32x32xf32>, vector<8x32xf32> -> vector<8x32xf32>
    %15 = vector.extract_strided_slice %14 {offsets = [0, 0], sizes = [8, 16], strides = [1, 1]} : vector<8x32xf32> to vector<8x16xf32>
    %c0_16 = arith.constant 0 : index
    %c0_17 = arith.constant 0 : index
    %c0_18 = arith.constant 0 : index
    %c0_19 = arith.constant 0 : index
    %16 = vector.load %arg8[%c0_16, %c0_17, %c0_18, %c0_19] : memref<1x1x8x16xf32, #tpu.memory_space<vmem>>, vector<1x1x8x16xf32>
    %17 = vector.shape_cast %16 : vector<1x1x8x16xf32> to vector<8x16xf32>
    %18 = vector.shape_cast %15 : vector<8x16xf32> to vector<1x1x8x16xf32>
    tpu.vector_store %arg8[%c0_16, %c0_17, %c0_18, %c0_19], %18 {strides = array<i32>} : memref<1x1x8x16xf32, #tpu.memory_space<vmem>>, vector<1x1x8x16xf32>,
    %19 = vector.extract_strided_slice %14 {offsets = [0, 16], sizes = [8, 16], strides = [1, 1]} : vector<8x32xf32> to vector<8x16xf32>
    %c0_20 = arith.constant 0 : index
    %c0_21 = arith.constant 0 : index
    %c0_22 = arith.constant 0 : index
    %c0_23 = arith.constant 0 : index
    %20 = vector.load %arg9[%c0_20, %c0_21, %c0_22, %c0_23] : memref<1x1x8x16xf32, #tpu.memory_space<vmem>>, vector<1x1x8x16xf32>
    %21 = vector.shape_cast %20 : vector<1x1x8x16xf32> to vector<8x16xf32>
    %22 = vector.shape_cast %19 : vector<8x16xf32> to vector<1x1x8x16xf32>
    tpu.vector_store %arg9[%c0_20, %c0_21, %c0_22, %c0_23], %22 {strides = array<i32>} : memref<1x1x8x16xf32, #tpu.memory_space<vmem>>, vector<1x1x8x16xf32>,
    return
  }
  func.func @transform_0(%arg0: i32, %arg1: i32, %arg2: i32) -> (i32, i32, i32) {
    %c0_i32 = arith.constant 0 : i32
    %c0_i32_0 = arith.constant 0 : i32
    return %arg0, %arg1, %c0_i32 : i32, i32, i32
  }
  func.func @transform_1(%arg0: i32, %arg1: i32, %arg2: i32) -> (i32, i32) {
    %c0_i32 = arith.constant 0 : i32
    %c0_i32_0 = arith.constant 0 : i32
    %c0_i32_1 = arith.constant 0 : i32
    return %c0_i32, %c0_i32_0 : i32, i32
  }
  func.func @transform_2(%arg0: i32, %arg1: i32, %arg2: i32) -> (i32, i32, i32) {
    %c0_i32 = arith.constant 0 : i32
    %c0_i32_0 = arith.constant 0 : i32
    %c0_i32_1 = arith.constant 0 : i32
    return %arg2, %c0_i32, %c0_i32_0 : i32, i32, i32
  }
  func.func @transform_3(%arg0: i32, %arg1: i32, %arg2: i32) -> (i32, i32, i32) {
    %c0_i32 = arith.constant 0 : i32
    %c0_i32_0 = arith.constant 0 : i32
    %c0_i32_1 = arith.constant 0 : i32
    return %arg2, %c0_i32, %c0_i32_0 : i32, i32, i32
  }
  func.func @transform_4(%arg0: i32, %arg1: i32, %arg2: i32) -> (i32, i32, i32, i32) {
    %c0_i32 = arith.constant 0 : i32
    %c0_i32_0 = arith.constant 0 : i32
    return %arg0, %arg2, %arg1, %c0_i32 : i32, i32, i32, i32
  }
  func.func @transform_5(%arg0: i32, %arg1: i32, %arg2: i32) -> (i32, i32, i32, i32) {
    %c0_i32 = arith.constant 0 : i32
    %c0_i32_0 = arith.constant 0 : i32
    return %arg0, %arg2, %arg1, %c0_i32 : i32, i32, i32, i32
  }
  func.func @transform_6(%arg0: i32, %arg1: i32, %arg2: i32) -> (i32, i32, i32, i32) {
    %c0_i32 = arith.constant 0 : i32
    %c0_i32_0 = arith.constant 0 : i32
    return %arg0, %arg2, %arg1, %c0_i32 : i32, i32, i32, i32
  }
}

</mosaic_0001>

<bundles_post_ra>
// kernel: tpu_custom_call.1
= control target key start
LH: loop header
LB: loop body
LE: loop exit
PB: predicated region body
PF: predicated region fallthrough
CT: control target
= control target key end

     0   :  { %12 = vsyncpa [#allocation4], 0  ;;  %s1374_s0 = inlined_call_operand.vmem [shape: f32[2,8,32], index: 0, kind: input, shape index: {}]   ;;  %s1375_s1 = inlined_call_operand.vmem [shape: f32[1,32], index: 1, kind: input, shape index: {}]   ;;  %s1376_s2 = inlined_call_operand.vmem [shape: f32[4,32,16], index: 2, kind: input, shape index: {}]   ;;  %s1377_s3 = inlined_call_operand.vmem [shape: f32[4,32,32], index: 3, kind: input, shape index: {}]   ;;  %s1378_s4 = inlined_call_operand.hbm [shape: f32[2,4,8,16], index: 4, kind: output, shape index: {0}]   ;;  %s1379_s5 = inlined_call_operand.hbm [shape: f32[2,4,8,16], index: 5, kind: output, shape index: {1}]   ;;  %s1380_s6 = inlined_call_operand.hbm [shape: f32[2,4,8,16], index: 6, kind: output, shape index: {2}]  }
   0x1   :  { %14 = vsyncpa [#allocation4 + $0x1], 0 }
   0x2   :  { %15 = vsyncpa [#allocation6], 0 }
   0x3   :  { %17 = vsyncpa [#allocation6 + $0x1], 0  ;;  %s1121_s21 = smov 0   ;;  %s1123_s22 = smov 0  }
   0x4   :  { %s1125_s23 = smov 0   ;;  %s1127_s24 = smov 0  }
   0x5   :  { %s1129_s25 = smov 0   ;;  %s1131_s26 = smov 0  }
   0x6   :  { %s1133_s27 = smov 0   ;;  %s1135_s28 = smov 0  }
   0x7 LB: > { %1389 = sst [smem:[#allocation10_spill]] %s1057_s23  ;;  %s1382_s29 = sadd.s32 4294967295, %s1077_s28   ;;  %s1077_s28 = sphi %s1135_s28, %s23_s28   ;;  %s1073_s27 = sphi %s1133_s27, %s1405_s27   ;;  %s1069_s26 = sphi %s1131_s26, %s1404_s26   ;;  %s1065_s25 = sphi %s1129_s25, %s1403_s25   ;;  %s1061_s24 = sphi %s1127_s24, %s1402_s24   ;;  %s1057_s23 = sphi %s1125_s23, %s1401_s23   ;;  %s1053_s22 = sphi %s1123_s22, %s1407_s22   ;;  %s1049_s21 = sphi %s1121_s21, %s1406_s21  }
   0x8   : > { %1390 = sst [smem:[#allocation11_spill]] %s1069_s26  ;;  %s1381_s30 = sadd.s32 4294967294, %s1077_s28  }
   0x9   : > { %1391 = sst [smem:[#allocation12_spill]] %s1073_s27  ;;  %s35_s7 = sadd.s32 1, %s1069_s26 }
   0xa   : > { %p36_p0 = scmp.ge.s32.totalorder %s35_s7, 4  ;;  %s42_s8 = sadd.s32 1, %s1073_s27 }
   0xb   : > { %p164_p1 = scmp.ne.s32.totalorder %s1057_s23, %s1053_s22  ;;  %p165_p2 = scmp.eq.s32.totalorder %s1382_s29, 7 }
   0xc   : > { %s1409_s7 = smov (%p36_p0, %s35_s7), 0  ;;  %s1411_s8 = smov (!%p36_p0, %s42_s8), %s1073_s27 }
   0xd   : > { %1392 = sst [smem:[#allocation13_spill]] %s1409_s7  ;;  %s148_s9 = ssub.s32 %s1069_s26, %s1409_s7 }
   0xe   : > { %p1174_p3 = por %p165_p2, %p164_p1  ;;  %p44_p4 = scmp.ge.s32.totalorder %s1411_s8, 2 }
   0xf   : > { %p170_p5 = scmp.ne.s32.totalorder %s1053_s22, %s1049_s21  ;;  %p171_p6 = scmp.eq.s32.totalorder %s1381_s30, 7 }
  0x10   : > { %p766_p7 = scmp.ge.s32.totalorder %s1077_s28, 1  ;;  %s1413_s8 = smov (%p44_p4, %s1411_s8), 0 }
  0x11   : > { %1394 = sst [smem:[#allocation14_spill]] %s1413_s8  ;;  %p1185_p8 = por %p171_p6, %p170_p5 }
  0x12   : > { %p278_p9 = scmp.lt.s32.totalorder %s1077_s28, 9  ;;  %s147_s12 = ssub.s32 %s1073_s27, %s1413_s8 }
  0x13   : > { %s154_s13 = sadd.s32 1, %s1057_s23  ;;  %s149_s14 = sor.u32 %s148_s9, %s147_s12 }
  0x14   : > { %p279_p10 = pnand %p766_p7, %p278_p9  ;;  %p152_p11 = scmp.eq.s32.totalorder %s149_s14, 0 }
  0x15   : > { %s1385_s16 = sand.u32 (!%p279_p10), 1, %s1053_s22   ;;  %p330_p12 = scmp.lt.s32.totalorder (!%p279_p10), %s1065_s25, 1 }
  0x16   : > { %s1194_s15 = scalar_select %p152_p11, %s1057_s23, %s154_s13  }
  0x17   : > { %282 = sbr.rel (%p279_p10) target bundleno = 549 (0x225), region = 36  ;;  %s1200_s17 = sshll.u32 (!%p279_p10), %s1385_s16, 3 }
  0x18   : > { %1396 = sst [smem:[#allocation15_spill]] %s1194_s15  ;;  %p337_p13 = scmp.lt.s32.totalorder (!%p279_p10), %s1061_s24, 3 }
  0x19   : > { %s315_s26 = scalar_lea.vmem (!%p279_p10), [#allocation3], %s1200_s17  ;;  %s322_s15 = scalar_lea.vmem (!%p279_p10), [#allocation5], %s1200_s17 }
  0x1a   : > { %s329_s23 = scalar_lea.vmem (!%p279_p10), [#allocation7], %s1200_s17  ;;  %p775_p0 = scmp.ne.s32.totalorder (!%p279_p10), %s1061_s24, 0 }
  0x1e   : > { %s331_s18 = scalar_select %p330_p12, %s1065_s25, 1 }
  0x1f   : > { %s338_s19 = scalar_select %p337_p13, %s1061_s24, 3 }
  0x20   : > { %s770_s20 = sshll.u32 %s331_s18, 3  ;;  %351 = sbr.rel (%p775_p0) target bundleno = 198 (0xc6), region = 40  ;;  %vm354_vm0 = vcmask (!%p775_p0), 261120   ;;  %v776_v6 = vld [vmem:[%s1375_s1] ss:$0 sm:$0xff] (!%p775_p0) }
  0x21   : > { %s336_s13 = scalar_lea.vmem %s1374_s0, %s770_s20  ;;  %s790_s14 = sshll.u32 %s338_s19, 5 }
  0x22   : > { %s1211_s8 = scalar_lea.vmem %s1376_s2, %s790_s14  ;;  %s346_s27 = scalar_lea.vmem %s1377_s3, %s790_s14  ;;  %v347_v0 = vld [vmem:[%s336_s13] sm:$0xff] }
  0x23   : > { %v353_v1 = vmul.f32 (!%p775_p0), %v347_v0, %v347_v0 }
  0x25   : > { %v355_v2 = vsel (!%p775_p0), %vm354_vm0, %v353_v1, 0.0 }
  0x26   : > { %356 = vadd.xlane.f32.xlu0 (!%p775_p0), %v355_v2 }
  0xb3   : > { %v357_v3 = vpop.xlane.xlu0 %356 }
  0xb4   : > { %v358_v4 = vmax.f32 %v357_v3, 1e-24 }
  0xb6   : > { %921 = vrsqrt.f32 %v358_v4 }
  0xc0   : > { %v922_v5 = vpop.eup %921 }
  0xc1   : > { %v360_v7 = vmul.f32 %v922_v5, %v347_v0 }
  0xc3   : > { %v367_v8 = vmul.f32 %v776_v6, %v360_v7 }
  0xc5   : > { %368 = vst.msk [vmem:[#allocation2] sm:$0xff] %vm354_vm0, %v367_v8 }
  0xc6 PF: > { %v450_v9 = vld [vmem:[%s346_s27] sm:$0xff]  ;;  %v451_v10 = vld [vmem:[%s346_s27 + $0x8] sm:$0xff]  ;;  %v452_v11 = vld [vmem:[%s346_s27 + $0x10] sm:$0xff]  ;;  %v1079_v12 = vmov 0.0|0.0   ;;  %vm1080_vm1 = vmmov 0   ;;  %v1081_v15 = vmov 0.0  }
  0xc7   : > { %830 = vmatprep.subr.bf16.mxu1 %v1079_v12  ;;  %v831_v13 = vpack.c.bf16 %v451_v10, %v450_v9  ;;  %v453_v14 = vld [vmem:[%s346_s27 + $0x18] sm:$0xff]  ;;  %821 = vmatprep.mubr.msk.f32.mxu1 %vm1080_vm1, %v1081_v15  ;;  %v370_v16 = vld [vmem:[%s1211_s8] sm:$0xff]  ;;  %v371_v17 = vld [vmem:[%s1211_s8 + $0x8] sm:$0xff]  ;;  %vm374_vm2 = vcmask 261120   ;;  %s782_s27 = sshll.u32 %s1065_s25, 2  ;;  %s576_s19 = sshll.u32 %s322_s15, 4  ;;  %s1245_s19 = int_to_ptr.vmem [resolvable:$true] %s576_s19 }
  0xc8   : > { %824 = vmatprep.subr.bf16.mxu0 %v1079_v12  ;;  %v825_v18 = vpack.c.bf16 %v371_v17, %v370_v16  ;;  %v372_v19 = vld [vmem:[%s1211_s8 + $0x10] sm:$0xff]  ;;  %v373_v20 = vld [vmem:[%s1211_s8 + $0x18] sm:$0xff]  ;;  %810 = vmatprep.mubr.msk.f32.mxu0 %vm1080_vm1, %v1081_v15  ;;  %v834_v21 = vpack.c.bf16 %v453_v14, %v452_v11  ;;  %s556_s7 = sadd.s32 %s1061_s24, %s782_s27  ;;  %s1397_s8 = sadd.s32 4294967295, %s1077_s28   ;;  %vm448_vm3 = vcmask 130048  }
  0xc9   : > { %832 = vmatpush3.bf16.msra.mxu1 %v831_v13  ;;  %v828_v22 = vpack.c.bf16 %v373_v20, %v372_v19  ;;  %s1231_s16 = sand.u32 1, %s1397_s8   ;;  %s1233_s18 = sshll.u32 %s556_s7, 7 }
  0xca   : > { %833 = vmatprep.subr.bf16.mxu1 %v1079_v12  ;;  %826 = vmatpush3.bf16.msra.mxu0 %v825_v18  ;;  %s560_s20 = sshll.u32 %s315_s26, 4  ;;  %s1243_s25 = scalar_lea.hbm %s1379_s5, %s1233_s18  ;;  %s1253_s20 = int_to_ptr.vmem [resolvable:$true] %s560_s20 }
  0xcb   : > { %827 = vmatprep.subr.bf16.mxu0 %v1079_v12  ;;  %s1251_s14 = scalar_lea.hbm %s1378_s4, %s1233_s18  ;;  %s1082_s29 = smov 112  }
  0xcc   : > { %v369_v23 = vld [vmem:[#allocation2] sm:$0xff]  ;;  %s539_s30 = scalar_lea.sflag [#allocation6], %s1231_s16  ;;  %s923_s27 = scalar_lea.vmem %s1245_s19, 128 }
  0xcd   : > { %835 = vmatpush3.bf16.msra.mxu1 %v834_v21  ;;  %p924_p1 = scmp.ne.s32.totalorder %s1245_s19, %s923_s27  ;;  %s1083_s7 = smov [#allocation5]  }
  0xce   : > { %829 = vmatpush3.bf16.msra.mxu0 %v828_v22  ;;  %s927_s8 = sshll.u32 %s1083_s7, 4  ;;  %s928_s8 = int_to_ptr.vmem [resolvable:$false] %s927_s8 }
  0xcf   : > { %p925_p2 = pnand %p924_p1, %p1174_p3  ;;  %s929_s9 = scalar_lea.vmem %s928_s8, 256 }
  0xd0   : > { %822 = vmatmul.mubr.msk.f32.vlgmr.msra.gmra.mrb[0].mxu1 %vm374_vm2, %v347_v0  ;;  %p930_p5 = scmp.lt.s32.totalorder %s1245_s19, %s928_s8  ;;  %p931_p6 = scmp.lt.s32.totalorder %s929_s9, %s923_s27 }
  0xd1   : > { %811 = vmatmul.mubr.msk.f32.vlgmr.msra.gmra.mrb[0].mxu0 %vm374_vm2, %v369_v23  ;;  %p926_p4 = pneg %p925_p2 }
  0xd2   : > { %p932_p7 = por %p931_p6, %p930_p5 }
  0xd4   : > { %p933_p9 = pnand %p932_p7, %p926_p4 }
 0x1a3   : > { %v523_v24 = vpop.f32.mrb[0].mxu1 }
 0x1a4   : > { %527 = vst.msk [vmem:[%s322_s15] sm:$0xff] %vm448_vm3, %v523_v24  ;;  %v823_v25 = vpop.f32.mrb[1].mxu1  ;;  %529 = vrot.lane.b32.xlu0 %v523_v24, %s1082_s29  ;;  %v444_v26 = vpop.f32.mrb[0].mxu0 }
 0x1a5   : > { %449 = vst.msk [vmem:[%s315_s26] sm:$0xff] %vm448_vm3, %v444_v26  ;;  %v812_v27 = vpop.f32.mrb[1].mxu0 }
 0x1a6   : > { %936 = shalt.err (!%p933_p9)
}
 0x1a7   : > { %s937_s26 = scalar_lea.hbm %s1243_s25, 128  ;;  %s941_s24 = scalar_lea.hbm %s1379_s5, 1024 }
 0x1a8   : > { %p938_p10 = scmp.ne.s32.totalorder %s1243_s25, %s937_s26  ;;  %p942_p13 = scmp.lt.u32.totalorder %s1243_s25, %s1379_s5 }
 0x1a9   : > { %p943_p0 = scmp.lt.u32.totalorder %s941_s24, %s937_s26  ;;  %p945_p2 = scmp.lt.u32.totalorder %s937_s26, %s1243_s25 }
 0x1aa   : > { %p939_p11 = pnand %p938_p10, %p1174_p3 }
 0x1ab   : > { %p944_p1 = por %p943_p0, %p942_p13 }
 0x1ac   : > { %p940_p12 = pneg %p939_p11 }
 0x1ad   : > { %p946_p4 = por %p945_p2, %p944_p1 }
 0x1af   : > { %p947_p5 = pnand %p946_p4, %p940_p12 }
 0x1b1   : > { %950 = shalt.err (!%p947_p5)
}
 0x1b2   : > { %837 = dma.vmem_to_hbm [thread:$0]  (%p1174_p3), %s1245_s19, 128, %s1243_s25, %s539_s30  }
 0x1b3   : > { %s1398_s27 = sand.u32 1, %s1053_s22   ;;  %s951_s8 = scalar_lea.vmem %s1253_s20, 128 }
 0x1b4   : > { %s534_s7 = scalar_lea.sflag [#allocation4], %s1398_s27  ;;  %p952_p6 = scmp.ne.s32.totalorder %s1253_s20, %s951_s8 }
 0x1b5   : > { %s1084_s9 = smov [#allocation3]  }
 0x1b6   : > { %p953_p7 = pnand %p952_p6, %p1174_p3  ;;  %s955_s26 = sshll.u32 %s1084_s9, 4  ;;  %s956_s26 = int_to_ptr.vmem [resolvable:$false] %s955_s26 }
 0x1b7   : > { %s957_s15 = scalar_lea.vmem %s956_s26, 256  ;;  %p958_p10 = scmp.lt.s32.totalorder %s1253_s20, %s956_s26 }
 0x1b8   : > { %p954_p9 = pneg %p953_p7  ;;  %p959_p11 = scmp.lt.s32.totalorder %s957_s15, %s951_s8 }
 0x1ba   : > { %p960_p12 = por %p959_p11, %p958_p10 }
 0x1bc   : > { %p961_p13 = pnand %p960_p12, %p954_p9 }
 0x1be   : > { %964 = shalt.err (!%p961_p13)
}
 0x1bf   : > { %s965_s19 = scalar_lea.hbm %s1251_s14, 128  ;;  %s969_s24 = scalar_lea.hbm %s1378_s4, 1024 }
 0x1c0   : > { %p966_p0 = scmp.ne.s32.totalorder %s1251_s14, %s965_s19  ;;  %p970_p4 = scmp.lt.u32.totalorder %s1251_s14, %s1378_s4 }
 0x1c1   : > { %p971_p5 = scmp.lt.u32.totalorder %s969_s24, %s965_s19  ;;  %p973_p7 = scmp.lt.u32.totalorder %s965_s19, %s1251_s14 }
 0x1c2   : > { %p967_p1 = pnand %p966_p0, %p1174_p3 }
 0x1c3   : > { %p972_p6 = por %p971_p5, %p970_p4 }
 0x1c4   : > { %p968_p2 = pneg %p967_p1 }
 0x1c5   : > { %p974_p9 = por %p973_p7, %p972_p6 }
 0x1c7   : > { %p975_p10 = pnand %p974_p9, %p968_p2 }
 0x1c9   : > { %978 = shalt.err (!%p975_p10)
}
 0x1ca   : > { %836 = dma.vmem_to_hbm [thread:$0]  (%p1174_p3), %s1253_s20, 128, %s1251_s14, %s534_s7  }
 0x1cb   : > { %s592_s27 = sshll.u32 %s329_s23, 4  ;;  %s1314_s26 = scalar_lea.hbm %s1380_s6, %s1233_s18  ;;  %s1316_s27 = int_to_ptr.vmem [resolvable:$true] %s592_s27 }
 0x1cc   : > { %s979_s15 = scalar_lea.vmem %s1316_s27, 128  ;;  %s1085_s20 = smov [#allocation7]  }
 0x1cd   : > { %p980_p11 = scmp.ne.s32.totalorder %s1316_s27, %s979_s15  ;;  %s983_s14 = sshll.u32 %s1085_s20, 4  ;;  %s984_s14 = int_to_ptr.vmem [resolvable:$false] %s983_s14 }
 0x1ce   : > { %s985_s7 = scalar_lea.vmem %s984_s14, 256  ;;  %p986_p0 = scmp.lt.s32.totalorder %s1316_s27, %s984_s14 }
 0x1cf   : > { %p981_p12 = pnand %p980_p11, %p1174_p3  ;;  %p987_p1 = scmp.lt.s32.totalorder %s985_s7, %s979_s15 }
 0x1d1   : > { %p982_p13 = pneg %p981_p12  ;;  %p988_p2 = por %p987_p1, %p986_p0 }
 0x1d3   : > { %p989_p4 = pnand %p988_p2, %p982_p13 }
 0x216   : > { %v530_v28 = vpop.permute.xlu0 %529 }
 0x217   : > { %532 = vst.msk [vmem:[%s329_s23] sm:$0xff] %vm448_vm3, %v530_v28 }
 0x218   : > { %992 = shalt.err (!%p989_p4)
}
 0x219   : > { %s993_s23 = scalar_lea.hbm %s1314_s26, 128  ;;  %s997_s19 = scalar_lea.hbm %s1380_s6, 1024 }
 0x21a   : > { %p994_p5 = scmp.ne.s32.totalorder %s1314_s26, %s993_s23  ;;  %p998_p9 = scmp.lt.u32.totalorder %s1314_s26, %s1380_s6 }
 0x21b   : > { %p999_p10 = scmp.lt.u32.totalorder %s997_s19, %s993_s23  ;;  %p1001_p12 = scmp.lt.u32.totalorder %s993_s23, %s1314_s26 }
 0x21c   : > { %p995_p6 = pnand %p994_p5, %p1174_p3 }
 0x21d   : > { %p1000_p11 = por %p999_p10, %p998_p9 }
 0x21e   : > { %p996_p7 = pneg %p995_p6 }
 0x21f   : > { %p1002_p13 = por %p1001_p12, %p1000_p11 }
 0x221   : > { %p1003_p0 = pnand %p1002_p13, %p996_p7 }
 0x223   : > { %1006 = shalt.err (!%p1003_p0)
}
 0x224   : > { %838 = dma.vmem_to_hbm [thread:$0]  (%p1174_p3), %s1316_s27, 128, %s1314_s26, %s539_s30  }
 0x225 PF: > { %p852_p1 = scmp.ge.s32.totalorder %s1077_s28, 2  ;;  %s604_s24 = sand.u32 1, %s1049_s21  }
 0x226   : > { %s605_s13 = scalar_lea.sflag [#allocation4], %s604_s24 }
 0x227   : > { %p843_p2 = pnand %p852_p1, %p1185_p8 }
 0x229   : > { %1040 = dma.done.wait (!%p843_p2), %s605_s13, 128  }
 0x22a   : > { %1042 = vsyncadd (!%p843_p2), %s605_s13, 4294967168  ;;  %s1399_s29 = sadd.s32 4294967294, %s1077_s28  }
 0x22b   : > { %s613_s8 = sand.u32 1, %s1399_s29  }
 0x22c   : > { %s614_s10 = scalar_lea.sflag [#allocation6], %s613_s8 }
 0x22d   : > { %1044 = dma.done.wait (!%p843_p2), %s614_s10, 256  }
 0x22e   : > { %1046 = vsyncadd (!%p843_p2), %s614_s10, 4294967040  ;;  %s23_s28 = sadd.s32 1, %s1077_s28   ;;  %s1400_s16 = sld [smem:[#allocation10_spill]] }
 0x22f   : > { %p20_p3 = scmp.ge.s32.totalorder %s23_s28, 10   ;;  %s1401_s23 = sld [smem:[#allocation15_spill]] }
 0x230   : > { %s1402_s24 = sld [smem:[#allocation11_spill]]  ;;  %s1403_s25 = sld [smem:[#allocation12_spill]] }
 0x231   : > { %s1404_s26 = sld [smem:[#allocation13_spill]]  ;;  %s1405_s27 = sld [smem:[#allocation14_spill]] }
 0x232   : > { %s1406_s21 = smov %s1053_s22  ;;  %22 = sbr.rel (!%p20_p3) target bundleno = 7 (0x7), region = 113 }
 0x234   : > { %s1407_s22 = smov %s1400_s16 }
 0x239   :  { %628 = vsyncpa [#allocation4], 1 }
 0x23a   :  { %630 = vsyncpa [#allocation4 + $0x1], 1 }
 0x23b   :  { %631 = vsyncpa [#allocation6], 1 }
 0x23c   :  { %633 = vsyncpa [#allocation6 + $0x1], 1 }

</bundles_post_ra>
